<compile_context>
chip_gen: v5e
topology: v5e:2x2
jax: 0.10.0
libtpu: 0.0.40
codegen_flags: <defaults>
</compile_context>

<pallas_src>
import jax
import jax.numpy as jnp
from jax.experimental import pallas as pl
from jax.experimental.pallas import tpu as pltpu

_LANE = 128                 # TPU lane width (last dim of the slab)
_SUBLANE = 8                # f32 sublane granularity
_TARGET_BLOCK_ROWS = 8192   # 8192 * 128 * 4 B = 4 MiB per tile
_FAST_PATH_BYTES = 1 << 20  # inputs smaller than 1 MiB skip pallas entirely


def _round_up(v, m):
    return -(-v // m) * m


def _fused_affine_kernel(params_ref, x_ref, o_ref):
    # params_ref (SMEM): [w_fused, b_fused]
    w = params_ref[0]
    b = params_ref[1]
    o_ref[...] = x_ref[...] * w + b


def _fused_affine_pallas(x2d, params):
    rows, lane = x2d.shape

    # Pick block_rows: big tiles to amortize the ~0.35 us/step overhead, but
    # make sure the parallel grid has >= 2 steps (v7x megacore) whenever the
    # input is large enough to split on a sublane boundary.
    if rows <= 2 * _SUBLANE:
        block_rows = rows                       # single full-array block
    else:
        half = _round_up(-(-rows // 2), _SUBLANE)
        block_rows = min(_TARGET_BLOCK_ROWS, half)
    grid_rows = pl.cdiv(rows, block_rows)       # ragged last block is masked

    return pl.pallas_call(
        _fused_affine_kernel,
        out_shape=jax.ShapeDtypeStruct((rows, lane), jnp.float32),
        grid=(grid_rows,),
        in_specs=[
            pl.BlockSpec(memory_space=pltpu.MemorySpace.SMEM),      # scalars
            pl.BlockSpec((block_rows, lane), lambda i: (i, 0)),     # input tile
        ],
        out_specs=pl.BlockSpec((block_rows, lane), lambda i: (i, 0)),
        compiler_params=pltpu.CompilerParams(
            dimension_semantics=("parallel",),
            vmem_limit_bytes=32 * 1024 * 1024,  # safe on v5e/v6e/v7x
        ),
    )(params, x2d)


def multiple_forward_model(x, w0, b0, w1, b1, *, force_pallas=False):
    """x: (N, 1, H, W) float32 -> (x1, x2), each (N, 1, H, W).

    x2 is numerically identical to x1 (conv1 applied twice to the same
    intermediate), so the same array is returned twice on purpose.
    """
    n, c, h, w = x.shape
    assert c == 1  # module is Conv2d(1, 1, 1, 1); 1-channel flatten below

    # Fuse the two 1x1 convs: (x*w0 + b0)*w1 + b1 == x*(w0*w1) + (b0*w1 + b1)
    w0f = jnp.asarray(w0, jnp.float32)
    b0f = jnp.asarray(b0, jnp.float32)
    w1f = jnp.asarray(w1, jnp.float32)
    b1f = jnp.asarray(b1, jnp.float32)
    wf = w0f * w1f
    bf = b0f * w1f + b1f

    total = n * c * h * w
    xf = x.astype(jnp.float32)

    # Small-input fast path: one fused XLA pass, no kernel launch overhead.
    if not force_pallas and total * 4 < _FAST_PATH_BYTES:
        y = xf * wf + bf
        return y, y

    params = jnp.stack([wf, bf]).astype(jnp.float32)
    flat = xf.reshape(total)

    # Lane-dense slab (rows, 128). Only pad the (<128 element) tail when the
    # element count is not lane-divisible; otherwise the reshape is free.
    rows = -(-total // _LANE)
    padded_total = rows * _LANE
    if padded_total != total:
        flat = jnp.pad(flat, (0, padded_total - total))
    x2d = flat.reshape(rows, _LANE)

    out2d = _fused_affine_pallas(x2d, params)

    y = out2d.reshape(padded_total)[:total].reshape(n, 1, h, w) \
        if padded_total != total else out2d.reshape(n, 1, h, w)
    return y, y


if __name__ == "__main__":
    key = jax.random.PRNGKey(0)
    x = jax.random.normal(key, (2, 1, 16, 16), dtype=jnp.float32)

    # Deterministic synthetic Conv2d(1,1,1,1) weight/bias scalars.
    w0, b0 = 0.5, -0.1    # self.conv
    w1, b1 = 1.5, 0.2     # self.conv1

    # Reference in plain JAX with the module's (un-fused) order of operations.
    h_ref = x * w0 + b0
    x1_ref = h_ref * w1 + b1

    # 1) Auto-dispatch path (small input -> fused jnp fast path).
    x1, x2 = multiple_forward_model(x, w0, b0, w1, b1)
    jax.block_until_ready((x1, x2))
    assert x1.shape == (2, 1, 16, 16) and x2.shape == (2, 1, 16, 16)
    assert jnp.allclose(x1, x1_ref, atol=1e-5)
    assert jnp.allclose(x2, x1_ref, atol=1e-5)

    # 2) Forced Pallas path so the kernel itself is compiled, run, and checked.
    x1p, x2p = multiple_forward_model(x, w0, b0, w1, b1, force_pallas=True)
    jax.block_until_ready((x1p, x2p))
    assert x1p.shape == (2, 1, 16, 16) and x2p.shape == (2, 1, 16, 16)
    assert jnp.allclose(x1p, x1_ref, atol=1e-5)
    assert jnp.allclose(x2p, x1_ref, atol=1e-5)

    print("KERNEL_OK")
</pallas_src>

<mosaic_0001>
module attributes {stable_mosaic.version = 11 : i64} {
  func.func @_fused_affine_kernel(%arg0: i32, %arg1: memref<2xf32, #tpu.memory_space<smem>>, %arg2: memref<4x128xf32, #tpu.memory_space<vmem>>, %arg3: memref<4x128xf32, #tpu.memory_space<vmem>>) attributes {dimension_semantics = [#tpu.dimension_semantics<parallel>], iteration_bounds = array<i64: 1>, scalar_prefetch = 0 : i64, scratch_operands = 0 : i64, tpu.core_type = #tpu.core_type<tc>, window_params = [{transform_indices = @transform_0, window_bounds = array<i64: 2>}, {transform_indices = @transform_1, window_bounds = array<i64: 4, 128>}, {transform_indices = @transform_2, window_bounds = array<i64: 4, 128>}]} {
    %c0 = arith.constant 0 : index
    %0 = memref.load %arg1[%c0] : memref<2xf32, #tpu.memory_space<smem>>
    %c1 = arith.constant 1 : index
    %1 = memref.load %arg1[%c1] : memref<2xf32, #tpu.memory_space<smem>>
    %c0_0 = arith.constant 0 : index
    %c0_1 = arith.constant 0 : index
    %2 = vector.load %arg2[%c0_0, %c0_1] : memref<4x128xf32, #tpu.memory_space<vmem>>, vector<4x128xf32>
    %3 = vector.broadcast %0 : f32 to vector<4x128xf32>
    %4 = arith.mulf %2, %3 : vector<4x128xf32>
    %5 = vector.broadcast %1 : f32 to vector<4x128xf32>
    %6 = arith.addf %4, %5 : vector<4x128xf32>
    %c0_2 = arith.constant 0 : index
    %c0_3 = arith.constant 0 : index
    %7 = vector.load %arg3[%c0_2, %c0_3] : memref<4x128xf32, #tpu.memory_space<vmem>>, vector<4x128xf32>
    tpu.vector_store %arg3[%c0_2, %c0_3], %6 {strides = array<i32>} : memref<4x128xf32, #tpu.memory_space<vmem>>, vector<4x128xf32>,
    return
  }
  func.func @transform_0(%arg0: i32) -> i32 {
    %c0_i32 = arith.constant 0 : i32
    %c0_i32_0 = arith.constant 0 : i32
    return %c0_i32 : i32
  }
  func.func @transform_1(%arg0: i32) -> (i32, i32) {
    %c0_i32 = arith.constant 0 : i32
    %c0_i32_0 = arith.constant 0 : i32
    return %arg0, %c0_i32 : i32, i32
  }
  func.func @transform_2(%arg0: i32) -> (i32, i32) {
    %c0_i32 = arith.constant 0 : i32
    %c0_i32_0 = arith.constant 0 : i32
    return %arg0, %c0_i32 : i32, i32
  }
}

</mosaic_0001>

<bundles_post_ra>
// kernel: tpu_custom_call.1
= control target key start
LH: loop header
LB: loop body
LE: loop exit
PB: predicated region body
PF: predicated region fallthrough
CT: control target
= control target key end

     0   :  { %7 = vsyncpa [#allocation5], 0  ;;  %s162_s0 = inlined_call_operand.hbm [shape: f32[2], index: 0, kind: input, shape index: {}]   ;;  %s163_s1 = inlined_call_operand.hbm [shape: f32[4,128], index: 1, kind: input, shape index: {}]   ;;  %s164_s2 = inlined_call_operand.hbm [shape: f32[4,128], index: 2, kind: output, shape index: {}]  }
   0x1   :  { %8 = vsyncpa [#allocation3], 0 }
   0x2   :  { %9 = vsyncpa [#allocation4], 0  ;;  %s15_s11 = sshll.u32 %s162_s0, 4  ;;  %s24_s14 = sshll.u32 %s163_s1, 4  ;;  %s16_s11 = int_to_ptr.hbm [resolvable:$true] %s15_s11  ;;  %s25_s14 = int_to_ptr.hbm [resolvable:$true] %s24_s14 }
   0x3   :  { %s135_s15 = smov [#allocation2]   ;;  %s136_s16 = smov [#allocation6]  }
   0x4   :  { %18 = dma.hbm_to_smem %s16_s11, 16, %s135_s15, [#allocation5]  }
   0x5   :  { %s26_s17 = sshll.u32 %s136_s16, 4  ;;  %s27_s17 = int_to_ptr.vmem [resolvable:$true] %s26_s17 }
   0x6   :  { %29 = dma.hbm_to_vmem [thread:$0]  %s25_s14, 64, %s27_s17, [#allocation3]  }
   0x7   :  { %129 = dma.done.wait [#allocation5], 16  }
   0x8   :  { %130 = vsyncadd [#allocation5], 4294967280 }
   0x9   :  { %131 = dma.done.wait [#allocation3], 64  }
   0xa   :  { %132 = vsyncadd [#allocation3], 4294967232 }
   0xb   :  { %38 = sfence }
   0xc   :  { %s39_s18 = sld [smem:[#allocation2]]  ;;  %v41_v0 = vld [vmem:[#allocation6] sm:$0xf]  ;;  %s137_s0 = smov [#allocation7]  }
   0xd   :  { %s65_s19 = sld [smem:[#allocation2 + $0x1]]  ;;  %s52_s20 = sshll.u32 %s137_s0, 4  ;;  %s53_s20 = int_to_ptr.vmem [resolvable:$true] %s52_s20 }
   0xe   :  { %s54_s22 = sshll.u32 %s164_s2, 4  ;;  %s55_s22 = int_to_ptr.hbm [resolvable:$true] %s54_s22 }
  0x12   :  { %v42_v1 = vstv %s39_s18 }
  0x13   :  { %v43_v2 = vmul.f32 %v42_v1, %v41_v0  ;;  %v44_v3 = vstv %s65_s19 }
  0x15   :  { %v45_v4 = vadd.f32 %v44_v3, %v43_v2 }
  0x17   :  { %46 = vst [vmem:[#allocation7] sm:$0xf] %v45_v4 }
  0x18   :  { %57 = dma.vmem_to_hbm [thread:$0]  %s53_s20, 64, %s55_s22, [#allocation4]  }
  0x19   :  { %133 = dma.done.wait [#allocation4], 64  }
  0x1a   :  { %134 = vsyncadd [#allocation4], 4294967232 }
  0x1b   :  { %62 = vsyncpa [#allocation3], 1 }
  0x1c   :  { %63 = vsyncpa [#allocation4], 1 }
  0x1d   :  { %64 = vsyncpa [#allocation5], 1 }

</bundles_post_ra>
